<compile_context>
chip_gen: v7x
topology: tpu7x:2x2x1
jax: 0.10.0
libtpu: 0.0.40
codegen_flags: <defaults>
</compile_context>

<pallas_src>
import functools

import jax
import jax.numpy as jnp
from jax.experimental import pallas as pl
from jax.experimental.pallas import tpu as pltpu


def rcf_kernel(*refs, use_channel_mul, offs, C, Cr, Pr):
    if use_channel_mul:
        backbone_ref, bypass_ref, params_ref, o_ref = refs
    else:
        backbone_ref, params_ref, o_ref = refs

    x = backbone_ref[...].astype(jnp.float32)      # (TB, C, S), S on lanes (lane-dense)
    P = params_ref[...]                            # packed f32 parameter slab

    def mat(name, rows, cols):                     # static, sublane-aligned slab slice
        r0 = offs[name]
        return P[r0:r0 + rows, 0:cols]

    w1t = mat("w1t", C, Cr)                        # (C, Cr)  == se_w1.T
    b1r = mat("b1r", 1, Cr)                        # (1, Cr)
    w2 = mat("w2", C, Cr)                          # (C, Cr)  == se_w2
    b2c = mat("b2c", C, 1)                         # (C, 1)

    # ---- SELayer(backbone): global avg pool -> FC -> ReLU -> FC -> Sigmoid ---------
    pool = jnp.mean(x, axis=-1, keepdims=True)                              # (TB, C, 1)
    h = jnp.sum(w1t[None] * pool, axis=1, keepdims=True) + b1r[None]        # (TB, 1, Cr)
    h = jnp.maximum(h, 0.0)
    z = jnp.sum(w2[None] * h, axis=-1, keepdims=True) + b2c[None]           # (TB, C, 1)
    scale = 1.0 / (1.0 + jnp.exp(-z))              # SE gate (exp on EUP)

    if use_channel_mul:
        y = bypass_ref[...].astype(jnp.float32)    # (TB, C, S)
        wm = mat("wm", C, 1)                       # (C, 1)
        bm = mat("bm", 1, 1)                       # (1, 1)
        wc1t = mat("wc1t", C, Pr)                  # (C, Pr) == mul_w1.T
        bc1r = mat("bc1r", 1, Pr)                  # (1, Pr)
        wc2 = mat("wc2", C, Pr)                    # (C, Pr) == mul_w2
        bc2c = mat("bc2c", C, 1)                   # (C, 1)

        # conv_mask (1x1 conv, C -> 1) + softmax over the spatial axis.
        logits = jnp.sum(x * wm[None], axis=1, keepdims=True) + bm[None]    # (TB, 1, S)
        logits = logits - jnp.max(logits, axis=-1, keepdims=True)
        e = jnp.exp(logits)
        # NOTE: approx=False -- the denominator is a tiny (TB,1,1) array so the EUP
        # approximation buys nothing here and would risk the 1e-4 accuracy check.
        attn = e * pl.reciprocal(jnp.sum(e, axis=-1, keepdims=True), approx=False)
        # context[b, c] = sum_s bypass[b, c, s] * attn[b, s]
        context = jnp.sum(y * attn, axis=-1, keepdims=True)                 # (TB, C, 1)
        # channel_mul_conv: 1x1 conv C->Pr, ReLU, 1x1 conv Pr->C, Sigmoid.
        m = jnp.sum(wc1t[None] * context, axis=1, keepdims=True) + bc1r[None]  # (TB,1,Pr)
        m = jnp.maximum(m, 0.0)
        m = jnp.sum(wc2[None] * m, axis=-1, keepdims=True) + bc2c[None]        # (TB,C,1)
        mul_gate = 1.0 / (1.0 + jnp.exp(-m))
        scale = scale * mul_gate                   # fuse both gates -> one big scaling pass

    # Single lane-dense pass over the big tile; output stored in the input dtype.
    o_ref[...] = (x * scale).astype(o_ref.dtype)


def _pack_params(named):
    """Pack the small 2-D f32 params into one slab; every entry 8-row (sublane) aligned."""
    lanes = max(int(a.shape[1]) for a in named.values())
    blocks, offs, r = [], {}, 0
    for name, a in named.items():
        a = jnp.asarray(a, jnp.float32)
        offs[name] = r
        pad_r = (-a.shape[0]) % 8
        block = jnp.pad(a, ((0, pad_r), (0, lanes - a.shape[1])))
        blocks.append(block)
        r += block.shape[0]
    return jnp.concatenate(blocks, axis=0), offs


def _choose_tb(batch, bytes_per_image, budget_bytes=20 * 1024 * 1024):
    """Images per grid step: as big as the VMEM budget allows, but >= 2 grid steps."""
    tb = max(1, min(batch, budget_bytes // max(1, bytes_per_image)))
    if batch >= 2:
        tb = min(tb, pl.cdiv(batch, 2))            # keep both v7x TensorCores busy
    for cand in range(tb, max(1, tb // 2), -1):    # prefer an exact divisor of batch
        if batch % cand == 0:
            return cand
    return tb                                      # partial last block: rows independent


def rcf_forward(backbone, bypass, params, fusions=("channel_add",)):
    """Forward pass of RCF (pool='att'). Returns the module's `out` tensor."""
    use_mul = "channel_mul" in fusions
    B, C, H, W = backbone.shape
    S = H * W
    Cr = params["se_w1"].shape[0]

    xb = backbone.reshape(B, C, S)                 # free view, native dtype (no wrapper cast)

    named = {
        "w1t": params["se_w1"].T,                  # (C, Cr)   torch Linear is (out, in)
        "b1r": params["se_b1"].reshape(1, Cr),
        "w2": params["se_w2"],                     # (C, Cr)
        "b2c": params["se_b2"].reshape(C, 1),
    }
    Pr = 0
    if use_mul:
        Pr = params["mul_w1"].shape[0]
        named.update({
            "wm": params["mask_w"].reshape(C, 1),          # (1,C,1,1) -> column
            "bm": params["mask_b"].reshape(1, 1),
            "wc1t": params["mul_w1"].reshape(Pr, C).T,     # (C, Pr)
            "bc1r": params["mul_b1"].reshape(1, Pr),
            "wc2": params["mul_w2"].reshape(C, Pr),        # (C, Pr)
            "bc2c": params["mul_b2"].reshape(C, 1),
        })
    slab, offs = _pack_params(named)

    itemsize = jnp.dtype(backbone.dtype).itemsize
    n_big_in = 2 if use_mul else 1
    f32_temps = 8 if use_mul else 5                # rough count of big f32 temporaries
    bytes_per_image = C * S * (2 * (n_big_in + 1) * itemsize + 4 * f32_temps)
    TB = _choose_tb(B, bytes_per_image)
    grid = (pl.cdiv(B, TB),)

    img_spec = pl.BlockSpec((TB, C, S), lambda n: (n, 0, 0))
    slab_spec = pl.BlockSpec(slab.shape, lambda n: (0, 0))

    if use_mul:
        yb = bypass.reshape(B, C, S).astype(backbone.dtype)
        inputs = [xb, yb, slab]
        in_specs = [img_spec, img_spec, slab_spec]
    else:
        # In the 'channel_add'-only config neither the spatial pool nor channel_add_conv
        # can reach the returned tensor, so bypass is never DMA'd at all.
        inputs = [xb, slab]
        in_specs = [img_spec, slab_spec]

    out = pl.pallas_call(
        functools.partial(rcf_kernel, use_channel_mul=use_mul, offs=offs,
                          C=C, Cr=Cr, Pr=Pr),
        out_shape=jax.ShapeDtypeStruct((B, C, S), backbone.dtype),
        grid_spec=pltpu.PrefetchScalarGridSpec(
            num_scalar_prefetch=0,
            grid=grid,                             # batched blocks; shards across TCs
            in_specs=in_specs,
            out_specs=img_spec,
        ),
        compiler_params=pltpu.CompilerParams(
            dimension_semantics=("parallel",),
            vmem_limit_bytes=32 * 1024 * 1024,     # safe on v5e/v6e (128 MiB) and v7x (64 MiB)
        ),
    )(*inputs)
    return out.reshape(B, C, H, W)


def _reference_forward(backbone, bypass, params, fusions=("channel_add",)):
    """Pure-JAX reference mirroring the PyTorch RCF.forward (pool='att')."""
    backbone = backbone.astype(jnp.float32)
    bypass = bypass.astype(jnp.float32)
    B, C, H, W = backbone.shape
    S = H * W
    # spatial_pool ('att'): mask from backbone, values from bypass.
    wm = params["mask_w"].reshape(1, C).astype(jnp.float32)
    bm = params["mask_b"].astype(jnp.float32).reshape(1,)
    logits = jnp.einsum("oc,bcs->bos", wm, backbone.reshape(B, C, S)) + bm[None, :, None]
    attn = jax.nn.softmax(logits, axis=2)                            # (B, 1, S)
    context = jnp.einsum("bcs,bos->bc", bypass.reshape(B, C, S), attn)
    # se_backone
    y = jnp.mean(backbone, axis=(2, 3))                              # (B, C)
    y = jnp.maximum(y @ params["se_w1"].T + params["se_b1"], 0.0)
    y = jax.nn.sigmoid(y @ params["se_w2"].T + params["se_b2"])
    backbone_se = backbone * y[:, :, None, None]
    if "channel_mul" in fusions:
        Pr = params["mul_w1"].shape[0]
        wc1 = params["mul_w1"].reshape(Pr, C)
        wc2 = params["mul_w2"].reshape(C, Pr)
        t = jnp.maximum(context @ wc1.T + params["mul_b1"], 0.0)
        t = t @ wc2.T + params["mul_b2"]
        out = backbone_se * jax.nn.sigmoid(t)[:, :, None, None]
    else:
        out = backbone_se
    # NOTE: torch's channel_add_conv(context) only rebinds the local `backbone`
    # variable after `out` is computed; it never reaches the returned tensor.
    return out


if __name__ == "__main__":
    key = jax.random.PRNGKey(0)
    kparam, kdata = jax.random.split(key)

    H, W = 16, 16
    inplanes = 16            # backbone / bypass channels
    planes = 16
    ratio = 2
    cr_se = inplanes // 2    # SELayer default reduction = 2
    pr = planes // ratio     # channel_mul hidden width

    kp = jax.random.split(kparam, 10)
    params = {
        "mask_w": 0.1 * jax.random.normal(kp[0], (1, inplanes, 1, 1), jnp.float32),
        "mask_b": 0.1 * jax.random.normal(kp[1], (1,), jnp.float32),
        "se_w1": 0.1 * jax.random.normal(kp[2], (cr_se, inplanes), jnp.float32),
        "se_b1": 0.1 * jax.random.normal(kp[3], (cr_se,), jnp.float32),
        "se_w2": 0.1 * jax.random.normal(kp[4], (inplanes, cr_se), jnp.float32),
        "se_b2": 0.1 * jax.random.normal(kp[5], (inplanes,), jnp.float32),
        "mul_w1": 0.1 * jax.random.normal(kp[6], (pr, inplanes, 1, 1), jnp.float32),
        "mul_b1": 0.1 * jax.random.normal(kp[7], (pr,), jnp.float32),
        "mul_w2": 0.1 * jax.random.normal(kp[8], (inplanes, pr, 1, 1), jnp.float32),
        "mul_b2": 0.1 * jax.random.normal(kp[9], (inplanes,), jnp.float32),
    }

    def make_inputs(batch, dtype, tag):
        k1, k2 = jax.random.split(jax.random.fold_in(kdata, tag))
        bb = jax.random.normal(k1, (batch, inplanes, H, W), jnp.float32).astype(dtype)
        bp = jax.random.normal(k2, (batch, inplanes, H, W), jnp.float32).astype(dtype)
        return bb, bp

    # 1) Default config (pool='att', fusions=['channel_add']), f32, B=2 -> TB=1, grid=(2,).
    bb, bp = make_inputs(2, jnp.float32, 0)
    out = jax.block_until_ready(rcf_forward(bb, bp, params, ("channel_add",)))
    ref = _reference_forward(bb, bp, params, ("channel_add",))
    assert out.shape == bb.shape and out.dtype == bb.dtype
    assert jnp.allclose(out, ref, atol=1e-4, rtol=1e-4)

    # 2) channel_mul fusion (attention spatial pool path), f32, B=8 -> TB=4, grid=(2,).
    bb, bp = make_inputs(8, jnp.float32, 1)
    out = jax.block_until_ready(
        rcf_forward(bb, bp, params, ("channel_add", "channel_mul")))
    ref = _reference_forward(bb, bp, params, ("channel_add", "channel_mul"))
    assert jnp.allclose(out, ref, atol=1e-4, rtol=1e-4)

    # 3) bf16 inputs: streamed in native dtype, upcast in-kernel to f32, bf16 output.
    bb16, bp16 = make_inputs(8, jnp.bfloat16, 2)
    out16 = jax.block_until_ready(
        rcf_forward(bb16, bp16, params, ("channel_add", "channel_mul")))
    ref16 = _reference_forward(bb16, bp16, params, ("channel_add", "channel_mul"))
    assert out16.dtype == jnp.bfloat16
    assert jnp.allclose(out16.astype(jnp.float32), ref16, atol=5e-2, rtol=5e-2)

    print("KERNEL_OK")
</pallas_src>

<mosaic_0001>
module attributes {stable_mosaic.version = 11 : i64} {
  func.func @rcf_kernel(%arg0: i32, %arg1: memref<1x16x256xf32, #tpu.memory_space<vmem>>, %arg2: memref<56x8xf32, #tpu.memory_space<vmem>>, %arg3: memref<1x16x256xf32, #tpu.memory_space<vmem>>) attributes {dimension_semantics = [#tpu.dimension_semantics<parallel>], iteration_bounds = array<i64: 2>, scalar_prefetch = 0 : i64, scratch_operands = 0 : i64, tpu.core_type = #tpu.core_type<tc>, window_params = [{transform_indices = @transform_0, window_bounds = array<i64: 1, 16, 256>}, {pipeline_mode = #tpu.pipeline_mode<synchronous>, transform_indices = @transform_1, window_bounds = array<i64: 56, 8>}, {transform_indices = @transform_2, window_bounds = array<i64: 1, 16, 256>}]} {
    %c0 = arith.constant 0 : index
    %c0_0 = arith.constant 0 : index
    %c0_1 = arith.constant 0 : index
    %0 = vector.load %arg1[%c0, %c0_0, %c0_1] : memref<1x16x256xf32, #tpu.memory_space<vmem>>, vector<1x16x256xf32>
    %c0_2 = arith.constant 0 : index
    %c0_3 = arith.constant 0 : index
    %1 = vector.load %arg2[%c0_2, %c0_3] : memref<56x8xf32, #tpu.memory_space<vmem>>, vector<56x8xf32>
    %2 = vector.extract_strided_slice %1 {offsets = [0, 0], sizes = [16, 8], strides = [1, 1]} : vector<56x8xf32> to vector<16x8xf32>
    %3 = vector.extract_strided_slice %1 {offsets = [16, 0], sizes = [1, 8], strides = [1, 1]} : vector<56x8xf32> to vector<1x8xf32>
    %4 = vector.extract_strided_slice %1 {offsets = [24, 0], sizes = [16, 8], strides = [1, 1]} : vector<56x8xf32> to vector<16x8xf32>
    %5 = vector.extract_strided_slice %1 {offsets = [40, 0], sizes = [16, 1], strides = [1, 1]} : vector<56x8xf32> to vector<16x1xf32>
    %cst = arith.constant dense<0.000000e+00> : vector<1x16xf32>
    %6 = vector.multi_reduction <add>, %0, %cst [2] : vector<1x16x256xf32> to vector<1x16xf32>
    %7 = vector.shape_cast %6 : vector<1x16xf32> to vector<1x16x1xf32>
    %cst_4 = arith.constant 2.560000e+02 : f32
    %8 = vector.broadcast %cst_4 : f32 to vector<1x16x1xf32>
    %9 = arith.divf %7, %8 : vector<1x16x1xf32>
    %10 = vector.shape_cast %2 : vector<16x8xf32> to vector<1x16x8xf32>
    %11 = vector.broadcast %9 : vector<1x16x1xf32> to vector<1x16x8xf32>
    %12 = arith.mulf %10, %11 : vector<1x16x8xf32>
    %cst_5 = arith.constant dense<0.000000e+00> : vector<1x8xf32>
    %13 = vector.multi_reduction <add>, %12, %cst_5 [1] : vector<1x16x8xf32> to vector<1x8xf32>
    %14 = vector.shape_cast %13 : vector<1x8xf32> to vector<1x1x8xf32>
    %15 = vector.shape_cast %3 : vector<1x8xf32> to vector<1x1x8xf32>
    %16 = arith.addf %14, %15 : vector<1x1x8xf32>
    %cst_6 = arith.constant 0.000000e+00 : f32
    %17 = vector.broadcast %cst_6 : f32 to vector<1x1x8xf32>
    %18 = arith.maximumf %16, %17 : vector<1x1x8xf32>
    %19 = vector.shape_cast %4 : vector<16x8xf32> to vector<1x16x8xf32>
    %20 = vector.broadcast %18 : vector<1x1x8xf32> to vector<1x16x8xf32>
    %21 = arith.mulf %19, %20 : vector<1x16x8xf32>
    %cst_7 = arith.constant dense<0.000000e+00> : vector<1x16xf32>
    %22 = vector.multi_reduction <add>, %21, %cst_7 [2] : vector<1x16x8xf32> to vector<1x16xf32>
    %23 = vector.shape_cast %22 : vector<1x16xf32> to vector<1x16x1xf32>
    %24 = vector.shape_cast %5 : vector<16x1xf32> to vector<1x16x1xf32>
    %25 = arith.addf %23, %24 : vector<1x16x1xf32>
    %cst_8 = arith.constant 0.000000e+00 : f32
    %26 = vector.broadcast %cst_8 : f32 to vector<1x16x1xf32>
    %27 = arith.subf %26, %25 : vector<1x16x1xf32>
    %28 = math.exp %27 : vector<1x16x1xf32>
    %cst_9 = arith.constant 1.000000e+00 : f32
    %29 = vector.broadcast %cst_9 : f32 to vector<1x16x1xf32>
    %30 = arith.addf %29, %28 : vector<1x16x1xf32>
    %cst_10 = arith.constant 1.000000e+00 : f32
    %31 = vector.broadcast %cst_10 : f32 to vector<1x16x1xf32>
    %32 = arith.divf %31, %30 : vector<1x16x1xf32>
    %33 = vector.broadcast %32 : vector<1x16x1xf32> to vector<1x16x256xf32>
    %34 = arith.mulf %0, %33 : vector<1x16x256xf32>
    %c0_11 = arith.constant 0 : index
    %c0_12 = arith.constant 0 : index
    %c0_13 = arith.constant 0 : index
    %35 = vector.load %arg3[%c0_11, %c0_12, %c0_13] : memref<1x16x256xf32, #tpu.memory_space<vmem>>, vector<1x16x256xf32>
    tpu.vector_store %arg3[%c0_11, %c0_12, %c0_13], %34 {strides = array<i32>} : memref<1x16x256xf32, #tpu.memory_space<vmem>>, vector<1x16x256xf32>,
    return
  }
  func.func @transform_0(%arg0: i32) -> (i32, i32, i32) {
    %c0_i32 = arith.constant 0 : i32
    %c0_i32_0 = arith.constant 0 : i32
    %c0_i32_1 = arith.constant 0 : i32
    return %arg0, %c0_i32, %c0_i32_0 : i32, i32, i32
  }
  func.func @transform_1(%arg0: i32) -> (i32, i32) {
    %c0_i32 = arith.constant 0 : i32
    %c0_i32_0 = arith.constant 0 : i32
    %c0_i32_1 = arith.constant 0 : i32
    return %c0_i32, %c0_i32_0 : i32, i32
  }
  func.func @transform_2(%arg0: i32) -> (i32, i32, i32) {
    %c0_i32 = arith.constant 0 : i32
    %c0_i32_0 = arith.constant 0 : i32
    %c0_i32_1 = arith.constant 0 : i32
    return %arg0, %c0_i32, %c0_i32_0 : i32, i32, i32
  }
}

</mosaic_0001>

<bundles_post_ra>
// kernel: tpu_custom_call.1
= control target key start
LH: loop header
LB: loop body
LE: loop exit
PB: predicated region body
PF: predicated region fallthrough
CT: control target
= control target key end

     0   :  { %7 = vsyncpa [#allocation3], 0  ;;  %s589_s0 = inlined_call_operand.vmem [shape: f32[2,16,256], index: 0, kind: input, shape index: {}]   ;;  %s590_s1 = inlined_call_operand.vmem [shape: f32[56,8], index: 1, kind: input, shape index: {}]   ;;  %s591_s2 = inlined_call_operand.hbm [shape: f32[2,16,256], index: 2, kind: output, shape index: {}]  }
   0x1   :  { %9 = vsyncpa [#allocation3 + $0x1], 0  ;;  %s445_s9 = smov 0   ;;  %s447_s10 = smov 0  }
   0x2   :  { %s449_s11 = smov 0   ;;  %s451_s12 = smov 0  }
   0x3 LB: > { %s466_s13 = sadd.s32 4294967295, %s424_s12   ;;  %s296_s14 = sadd.s32 4294967294, %s424_s12   ;;  %s424_s12 = sphi %s451_s12, %s597_s12   ;;  %s420_s11 = sphi %s449_s11, %s596_s11   ;;  %s416_s10 = sphi %s447_s10, %s595_s10   ;;  %s412_s9 = sphi %s445_s9, %s594_s9  }
   0x4   : > { %s470_s15 = sadd.s32 1, %s424_s12   ;;  %s69_s16 = sadd.s32 1, %s420_s11 }
   0x5   : > { %s66_s17 = ssub.s32 %s424_s12, %s470_s15  ;;  %p79_p0 = scmp.ne.s32.totalorder %s420_s11, %s416_s10 }
   0x6   : > { %p67_p1 = scmp.eq.s32.totalorder %s66_s17, 0  ;;  %p80_p2 = scmp.eq.s32.totalorder %s466_s13, 1 }
   0x7   : > { %p85_p3 = scmp.ne.s32.totalorder %s416_s10, %s412_s9  ;;  %p86_p4 = scmp.eq.s32.totalorder %s296_s14, 1 }
   0x8   : > { %s481_s18 = scalar_select %p67_p1, %s420_s11, %s69_s16  }
   0x9   : > { %p483_p5 = por %p80_p2, %p79_p0  ;;  %p487_p6 = por %p86_p4, %p85_p3 }
   0xa   : > { %p299_p7 = scmp.ge.s32.totalorder %s424_s12, 1  ;;  %p115_p8 = scmp.lt.s32.totalorder %s424_s12, 3 }
   0xc   : > { %p116_p9 = pnand %p299_p7, %p115_p8 }
   0xd   : > { %p137_p10 = scmp.lt.s32.totalorder (!%p116_p9), %s466_s13, 1  ;;  %v146_v8 = vld [vmem:[%s590_s1] sm:$0xff] (!%p116_p9)  ;;  %v147_v9 = vld [vmem:[%s590_s1 + $0x8] sm:$0xff] (!%p116_p9)  ;;  %vm164_vm0 = vcmask (!%p116_p9), 64512   ;;  %v176_v20 = vlaneseq (!%p116_p9)  ;;  %v148_v24 = vld [vmem:[%s590_s1 + $0x10] sm:$0xff] (!%p116_p9)  ;;  %v426_v36 = vmov (!%p116_p9), 0  }
   0xe   : > { %119 = sbr.rel (%p116_p9) target bundleno = 523 (0x20b), region = 28  ;;  %v149_v29 = vld [vmem:[%s590_s1 + $0x18] sm:$0xff] (!%p116_p9)  ;;  %v150_v31 = vld [vmem:[%s590_s1 + $0x20] sm:$0xff] (!%p116_p9)  ;;  %352 = vset.pattern.permute.xlu0 (!%p116_p9), %v426_v36  ;;  %353 = vset.pattern.permute.xlu1 (!%p116_p9), %v426_v36  ;;  %v151_v37 = vld [vmem:[%s590_s1 + $0x28] sm:$0xff] (!%p116_p9)  ;;  %s427_s30 = smov (!%p116_p9), [#allocation2]  }
   0xf   : > { %v177_v23 = vshrl.u32 (!%p116_p9), %v176_v20, 7  ;;  %v152_v40 = vld [vmem:[%s590_s1 + $0x30] sm:$0xff] (!%p116_p9)  ;;  %s366_s3 = sshll.u32 (!%p116_p9), %s427_s30, 4  ;;  %s367_s3 = int_to_ptr.vmem [resolvable:$false] %s366_s3 }
  0x10   : > { %s368_s4 = scalar_lea.vmem (!%p116_p9), %s367_s3, 1024 }
  0x11   : > { %v178_v27 = vsub.s32 (!%p116_p9), 0, %v177_v23 }
  0x15   : > { %s138_s21 = scalar_select %p137_p10, %s466_s13, 1 }
  0x17   : > { %s308_s22 = sshll.u32 %s138_s21, 5  ;;  %s134_s21 = sand.u32 1, %s416_s10  }
  0x18   : > { %s141_s25 = scalar_lea.vmem %s589_s0, %s308_s22  ;;  %s300_s22 = sshll.u32 %s134_s21, 5 }
  0x19   : > { %v498_v0 = vld [vmem:[%s141_s25] sm:$0xff]  ;;  %v500_v1 = vld [vmem:[%s141_s25 + $0x8] sm:$0xff]  ;;  %v502_v2 = vld [vmem:[%s141_s25 + $0x10] sm:$0xff]  ;;  %s136_s23 = scalar_lea.vmem [#allocation2], %s300_s22 }
  0x1a   : > { %v153_v3 = vadd.f32 %v500_v1, %v498_v0  ;;  %v506_v4 = vld [vmem:[%s141_s25 + $0x18] sm:$0xff]  ;;  %s234_s24 = sshll.u32 %s136_s23, 4  ;;  %s309_s25 = sshll.u32 %s466_s13, 9  ;;  %s539_s24 = int_to_ptr.vmem [resolvable:$true] %s234_s24 }
  0x1b   : > { %v156_v5 = vadd.f32 %v506_v4, %v502_v2  ;;  %s544_s28 = scalar_lea.hbm %s591_s2, %s309_s25  ;;  %s548_s13 = scalar_lea.sflag [#allocation3], %s134_s21 }
  0x1c   : > { %154 = vadd.xlane.f32.xlu0 %v153_v3  ;;  %s362_s29 = scalar_lea.vmem %s539_s24, 512  ;;  %p369_p0 = scmp.lt.s32.totalorder %s539_s24, %s367_s3 }
  0x1d   : > { %p363_p11 = scmp.ne.s32.totalorder %s539_s24, %s362_s29  ;;  %p370_p1 = scmp.lt.s32.totalorder %s368_s4, %s362_s29 }
  0x1f   : > { %p364_p12 = pnand %p363_p11, %p483_p5  ;;  %p371_p2 = por %p370_p1, %p369_p0 }
  0x20   : > { %157 = vadd.xlane.f32.xlu0 %v156_v5 }
  0x21   : > { %p365_p13 = pneg %p364_p12 }
  0x23   : > { %p372_p3 = pnand %p371_p2, %p365_p13 }
  0xa9   : > { %v155_v6 = vpop.xlane.xlu0 %154 }
  0xaa   : > { %v160_v7 = vmul.f32 0.00390625, %v155_v6 }
  0xac   : > { %v162_v11 = vmul.f32 %v160_v7, %v146_v8 }
  0xad   : > { %v158_v10 = vpop.xlane.xlu0 %157 }
  0xae   : > { %v161_v12 = vmul.f32 0.00390625, %v158_v10  ;;  %v165_v14 = vsel %vm164_vm0, %v162_v11, 0.0 }
  0xb0   : > { %v163_v13 = vmul.f32 %v161_v12, %v147_v9 }
  0xb2   : > { %v166_v15 = vsel %vm164_vm0, %v163_v13, 0.0 }
  0xb3   : > { %v167_v16 = vadd.f32 %v166_v15, %v165_v14 }
  0xb5   : > { %v168_v17 = vrot.slane %v167_v16, 4 }
  0xb7   : > { %v169_v18 = vadd.f32 %v168_v17, %v167_v16 }
  0xb9   : > { %v170_v19 = vrot.slane %v169_v18, 2 }
  0xbb   : > { %v171_v21 = vadd.f32 %v170_v19, %v169_v18 }
  0xbd   : > { %v172_v22 = vrot.slane %v171_v21, 1 }
  0xbf   : > { %v173_v25 = vadd.f32 %v172_v22, %v171_v21 }
  0xc1   : > { %v174_v26 = vadd.f32 %v173_v25, %v148_v24 }
  0xc3   : > { %v175_v28 = vmax.f32 %v174_v26, 0.0 }
  0xc5   : > { %v179_v30 = vrot.slane %v175_v28, %v178_v27 }
  0xc7   : > { %v180_v32 = vmul.f32 %v179_v30, %v149_v29  ;;  %v181_v34 = vmul.f32 %v179_v30, %v150_v31 }
  0xc9   : > { %v182_v33 = vsel %vm164_vm0, %v180_v32, 0.0  ;;  %v185_v35 = vsel %vm164_vm0, %v181_v34, 0.0 }
  0xca   : > { %183 = vadd.xlane.f32.xlu1 %v182_v33 }
  0xce   : > { %186 = vadd.xlane.f32.xlu1 %v185_v35 }
 0x157   : > { %v184_v38 = vpop.xlane.xlu1 %183 }
 0x158   : > { %v188_v39 = vadd.f32 %v184_v38, %v151_v37 }
 0x15a   : > { %v190_v41 = vsub.f32 0.0, %v188_v39 }
 0x15b   : > { %v187_v42 = vpop.xlane.xlu1 %186 }
 0x15c   : > { %v192_v43 = vmul.f32 1.442695, %v190_v41  ;;  %v189_v44 = vadd.f32 %v187_v42, %v152_v40 }
 0x15e   : > { %354 = vpow2.f32 %v192_v43  ;;  %v191_v45 = vsub.f32 0.0, %v189_v44 }
 0x160   : > { %v194_v46 = vmul.f32 1.442695, %v191_v45 }
 0x162   : > { %356 = vpow2.f32 %v194_v46 }
 0x168   : > { %v355_v47 = vpop.eup %354 }
 0x169   : > { %v196_v48 = vadd.f32 1.0, %v355_v47 }
 0x16b   : > { %358 = vrcp.f32 %v196_v48 }
 0x16c   : > { %v357_v49 = vpop.eup %356 }
 0x16d   : > { %v197_v50 = vadd.f32 1.0, %v357_v49 }
 0x16f   : > { %360 = vrcp.f32 %v197_v50 }
 0x175   : > { %v359_v51 = vpop.eup %358 }
 0x176   : > { %204 = vperm.xlu0 %352, %v359_v51  }
 0x179   : > { %v361_v52 = vpop.eup %360 }
 0x17a   : > { %209 = vperm.xlu1 %353, %v361_v52  }
 0x1f5   : > { %v205_v53 = vpop.permute.xlu0 %204 }
 0x1f6   : > { %v212_v54 = vmul.f32 %v205_v53, %v498_v0  ;;  %v213_v55 = vmul.f32 %v205_v53, %v500_v1 }
 0x1f8   : > { %216 = vst [vmem:[%s136_s23] sm:$0xff] %v212_v54  ;;  %217 = vst [vmem:[%s136_s23 + $0x8] sm:$0xff] %v213_v55 }
 0x1f9   : > { %v210_v56 = vpop.permute.xlu1 %209 }
 0x1fa   : > { %v214_v57 = vmul.f32 %v210_v56, %v502_v2  ;;  %v215_v58 = vmul.f32 %v210_v56, %v506_v4 }
 0x1fc   : > { %218 = vst [vmem:[%s136_s23 + $0x10] sm:$0xff] %v214_v57  ;;  %219 = vst [vmem:[%s136_s23 + $0x18] sm:$0xff] %v215_v58 }
 0x1fd   : > { %375 = shalt.err (!%p372_p3)
}
 0x1fe   : > { %s376_s5 = scalar_lea.hbm %s544_s28, 512  ;;  %s380_s8 = scalar_lea.hbm %s591_s2, 1024 }
 0x1ff   : > { %p377_p4 = scmp.ne.s32.totalorder %s544_s28, %s376_s5  ;;  %p381_p9 = scmp.lt.u32.totalorder %s544_s28, %s591_s2 }
 0x200   : > { %p382_p10 = scmp.lt.u32.totalorder %s380_s8, %s376_s5  ;;  %p384_p12 = scmp.lt.u32.totalorder %s376_s5, %s544_s28 }
 0x201   : > { %p378_p7 = pnand %p377_p4, %p483_p5 }
 0x202   : > { %p383_p11 = por %p382_p10, %p381_p9 }
 0x203   : > { %p379_p8 = pneg %p378_p7 }
 0x204   : > { %p385_p13 = por %p384_p12, %p383_p11 }
 0x206   : > { %p386_p0 = pnand %p385_p13, %p379_p8 }
 0x208   : > { %389 = shalt.err (!%p386_p0)
}
 0x209   : > { %s428_s17 = smov 256   ;;  %s429_s21 = smov 16  }
 0x20a   : > { %310 = dma.vmem_to_hbm [thread:$0]  (%p483_p5), %s539_s24, 512, %s544_s28, %s548_s13, %s428_s17, %s428_s17, %s429_s21  }
 0x20b PF: > { %p316_p1 = scmp.ge.s32.totalorder %s424_s12, 2  ;;  %s249_s22 = sand.u32 1, %s412_s9  }
 0x20c   : > { %s250_s23 = scalar_lea.sflag [#allocation3], %s249_s22 }
 0x20d   : > { %p313_p2 = pnand %p316_p1, %p487_p6 }
 0x20f   : > { %407 = dma.done.wait (!%p313_p2), %s250_s23, 512  }
 0x210   : > { %409 = vsyncadd (!%p313_p2), %s250_s23, 4294966784  ;;  %p12_p3 = scmp.ge.s32.totalorder %s470_s15, 4   ;;  %s594_s9 = smov %s416_s10 }
 0x211   : > { %s595_s10 = smov %s420_s11  ;;  %s596_s11 = smov %s481_s18 }
 0x212   : > { %s597_s12 = smov %s470_s15  ;;  %14 = sbr.rel (!%p12_p3) target bundleno = 3 (0x3), region = 63 }
 0x219   :  { %255 = vsyncpa [#allocation3], 1 }
 0x21a   :  { %257 = vsyncpa [#allocation3 + $0x1], 1 }

</bundles_post_ra>
